<compile_context>
chip_gen: v6e
topology: v6e:2x2x1
jax: 0.10.0
libtpu: 0.0.40
codegen_flags: <defaults>
</compile_context>

<pallas_src>
import jax
import jax.numpy as jnp
from jax.experimental import pallas as pl
from jax.experimental.pallas import tpu as pltpu

LANE = 128
SUBLANE = 8


def _round_up(x, m):
    return (x + m - 1) // m * m


def _cdiv(a, b):
    return -(-a // b)


def _vmem_capacity_bytes():
    """Per-generation VMEM capacity (v5e/v6e: 128 MiB, v7x: 64 MiB)."""
    try:
        info = pltpu.get_tpu_info()
        for name in ("vmem_capacity_bytes", "vmem_size_bytes", "vmem_bytes"):
            v = getattr(info, name, None)
            if v:
                return int(v)
    except Exception:
        pass
    return 64 * 1024 * 1024  # safe floor (v7x per-core VMEM)


def _resident_spec(shape, index_map, single_buffer):
    """BlockSpec for a grid-invariant (resident) operand.

    Single-buffered when supported: the index_map is constant, so the default
    double-buffering would only waste VMEM.
    """
    if single_buffer:
        try:
            return pl.BlockSpec(shape, index_map, pipeline_mode=pl.Buffered(1))
        except Exception:
            pass
    return pl.BlockSpec(shape, index_map)


# ---------------------------------------------------------------------------
# Kernels
# ---------------------------------------------------------------------------
def _mlp_resident_kernel(x_ref, w5_ref, b5_ref, w6_ref, b6_ref, o_ref):
    """One batch tile of  out = relu(x @ W5 + b5) @ W6 + b6  (weights resident)."""
    x = x_ref[...].astype(w5_ref.dtype)            # in-kernel cast (VPU, free)
    y = jnp.dot(x, w5_ref[...], preferred_element_type=jnp.float32)
    y = jnp.maximum(y + b5_ref[...], 0.0)          # f32 epilogue
    out = jnp.dot(y.astype(w6_ref.dtype), w6_ref[...],
                  preferred_element_type=jnp.float32)
    o_ref[...] = (out + b6_ref[...]).astype(o_ref.dtype)


def _mlp_htiled_kernel(x_ref, w5_ref, b5_ref, w6_ref, b6_ref, o_ref, acc_ref):
    """Fallback: hidden dim tiled over grid axis 1 with a VMEM f32 accumulator."""
    h = pl.program_id(1)

    @pl.when(h == 0)
    def _():
        acc_ref[...] = jnp.zeros_like(acc_ref)

    x = x_ref[...].astype(w5_ref.dtype)
    y = jnp.dot(x, w5_ref[...], preferred_element_type=jnp.float32)
    y = jnp.maximum(y + b5_ref[...], 0.0)
    acc_ref[...] += jnp.dot(y.astype(w6_ref.dtype), w6_ref[...],
                            preferred_element_type=jnp.float32)

    @pl.when(h == pl.num_programs(1) - 1)
    def _():
        o_ref[...] = (acc_ref[...] + b6_ref[...]).astype(o_ref.dtype)


# ---------------------------------------------------------------------------
# One-time parameter preparation (hoisted out of the forward pass):
# transpose PyTorch (out, in) weights to (in, out), pad lane dims to 128,
# cast matmul operands to the compute dtype. Biases stay f32 (f32 epilogue).
# ---------------------------------------------------------------------------
def prepare_params(params, *, compute_dtype=jnp.bfloat16):
    w5 = jnp.asarray(params["fc5_w"], jnp.float32).T      # (input_dim, hidden)
    w6 = jnp.asarray(params["fc6_w"], jnp.float32).T      # (hidden, output)
    b5 = jnp.asarray(params["fc5_b"], jnp.float32)
    b6 = jnp.asarray(params["fc6_b"], jnp.float32)

    in_dim, hid = w5.shape
    hid2, out_dim = w6.shape
    assert hid == hid2
    if in_dim != hid:
        raise ValueError(
            "mlp_classifier6 forward only type-checks when input_dim == "
            f"hidden_dim (got {in_dim} vs {hid}).")

    hid_p = _round_up(hid, LANE)
    out_p = _round_up(out_dim, LANE)

    w5_p = jnp.zeros((in_dim, hid_p), compute_dtype)
    w5_p = w5_p.at[:, :hid].set(w5.astype(compute_dtype))
    w6_p = jnp.zeros((hid_p, out_p), compute_dtype)
    w6_p = w6_p.at[:hid, :out_dim].set(w6.astype(compute_dtype))
    b5_p = jnp.zeros((1, hid_p), jnp.float32).at[0, :hid].set(b5)
    b6_p = jnp.zeros((1, out_p), jnp.float32).at[0, :out_dim].set(b6)

    return {
        "w5": w5_p, "b5": b5_p, "w6": w6_p, "b6": b6_p,
        "input_dim": in_dim, "hidden_dim": hid, "output_dim": out_dim,
        "compute_dtype": compute_dtype,
    }


# ---------------------------------------------------------------------------
# Forward: batch-tiled pallas_call; weights resident (or hidden-tiled fallback).
# ---------------------------------------------------------------------------
def mlp_classifier6_forward(x, prep, *, force_hidden_tiling=False, tile_h=None):
    B, in_dim = x.shape
    if in_dim != prep["input_dim"]:
        raise ValueError(f"x feature dim {in_dim} != input_dim {prep['input_dim']}")

    w5, b5, w6, b6 = prep["w5"], prep["b5"], prep["w6"], prep["b6"]
    cdt = prep["compute_dtype"]
    hid_p = w5.shape[1]
    o_pad = w6.shape[1]
    out_dim = prep["output_dim"]
    out_dtype = x.dtype

    wsize = jnp.dtype(cdt).itemsize
    x_item = jnp.dtype(x.dtype).itemsize
    o_item = jnp.dtype(out_dtype).itemsize

    vmem_budget = int(0.85 * _vmem_capacity_bytes())

    resident_w_bytes = ((in_dim * hid_p + hid_p * o_pad) * wsize
                        + (hid_p + o_pad) * 4)
    use_htiled = force_hidden_tiling or resident_w_bytes > int(0.4 * vmem_budget)

    # ---- hidden tiling for the fallback path (tile_h must divide hid_p so
    # edge blocks never read undefined data on the fc6 contraction dim) ----
    tile_h_eff = hid_p
    grid_h = 1
    if use_htiled:
        if tile_h is None:
            per_row = (in_dim + o_pad) * wsize
            want = max(LANE,
                       (int(0.2 * vmem_budget) // max(per_row, 1)) // LANE * LANE)
        else:
            want = max(LANE, (tile_h // LANE) * LANE)
        n128 = hid_p // LANE
        d = min(max(want // LANE, 1), n128)
        while n128 % d:
            d -= 1
        tile_h_eff = d * LANE
        grid_h = hid_p // tile_h_eff
        fixed_bytes = (2 * tile_h_eff * (in_dim + o_pad) * wsize   # streamed W5/W6
                       + 2 * tile_h_eff * 4 + o_pad * 4)           # b5 stream + b6
    else:
        fixed_bytes = resident_w_bytes
    h_chunk = tile_h_eff if use_htiled else hid_p

    # ---- batch tile: ~2 MiB of streamed x per grid step; >= 2 tiles when
    # the batch is large enough so both v7x TensorCores get work ----
    tile_cap = (2 * 1024 * 1024) // max(in_dim * x_item, 1)
    tile_cap = max(256, min(4096, (tile_cap // 256) * 256))
    if B > tile_cap:
        tile_b = tile_cap
    elif B >= 4 * SUBLANE:
        tile_b = _round_up(_cdiv(B, 2), SUBLANE)
    else:
        tile_b = B                      # single full-batch block (always legal)

    def act_bytes(tb):
        return (2 * tb * in_dim * x_item          # x tile (double-buffered)
                + 2 * tb * o_pad * o_item         # out tile (double-buffered)
                + tb * h_chunk * (4 + wsize)      # y (f32) + cast copy for fc6
                + 2 * tb * o_pad * 4)             # f32 result / accumulator

    min_tile = min(tile_b, 256)
    while tile_b > min_tile and fixed_bytes + act_bytes(tile_b) > vmem_budget:
        tile_b = max(min_tile, _round_up(tile_b // 2, SUBLANE))
    grid_b = _cdiv(B, tile_b)

    vmem_limit = int(min(vmem_budget,
                         max(int(1.5 * (fixed_bytes + act_bytes(tile_b))),
                             32 * 1024 * 1024)))

    flops = 2 * B * in_dim * hid_p + 2 * B * hid_p * o_pad
    bytes_accessed = (B * in_dim * x_item
                      + (in_dim * hid_p + hid_p * o_pad) * wsize
                      + (hid_p + o_pad) * 4
                      + B * o_pad * o_item)
    cost = pl.CostEstimate(flops=int(flops), transcendentals=0,
                           bytes_accessed=int(bytes_accessed))

    if not use_htiled:
        def build(single_buffer):
            return pl.pallas_call(
                _mlp_resident_kernel,
                out_shape=jax.ShapeDtypeStruct((B, o_pad), out_dtype),
                grid=(grid_b,),
                in_specs=[
                    pl.BlockSpec((tile_b, in_dim), lambda i: (i, 0)),   # x streams
                    _resident_spec((in_dim, hid_p), lambda i: (0, 0), single_buffer),
                    _resident_spec((1, hid_p), lambda i: (0, 0), single_buffer),
                    _resident_spec((hid_p, o_pad), lambda i: (0, 0), single_buffer),
                    _resident_spec((1, o_pad), lambda i: (0, 0), single_buffer),
                ],
                out_specs=pl.BlockSpec((tile_b, o_pad), lambda i: (i, 0)),
                compiler_params=pltpu.CompilerParams(
                    dimension_semantics=("parallel",),
                    vmem_limit_bytes=vmem_limit),
                cost_estimate=cost,
            )
    else:
        def build(single_buffer):
            return pl.pallas_call(
                _mlp_htiled_kernel,
                out_shape=jax.ShapeDtypeStruct((B, o_pad), out_dtype),
                grid=(grid_b, grid_h),
                in_specs=[
                    pl.BlockSpec((tile_b, in_dim), lambda i, h: (i, 0)),
                    pl.BlockSpec((in_dim, tile_h_eff), lambda i, h: (0, h)),
                    pl.BlockSpec((1, tile_h_eff), lambda i, h: (0, h)),
                    pl.BlockSpec((tile_h_eff, o_pad), lambda i, h: (h, 0)),
                    _resident_spec((1, o_pad), lambda i, h: (0, 0), single_buffer),
                ],
                out_specs=pl.BlockSpec((tile_b, o_pad), lambda i, h: (i, 0)),
                scratch_shapes=[pltpu.VMEM((tile_b, o_pad), jnp.float32)],
                compiler_params=pltpu.CompilerParams(
                    dimension_semantics=("parallel", "arbitrary"),
                    vmem_limit_bytes=vmem_limit),
                cost_estimate=cost,
            )

    try:
        out_padded = build(True)(x, w5, b5, w6, b6)
    except Exception:
        # Fallback for jax versions where pipeline_mode / Buffered(1) is rejected.
        out_padded = build(False)(x, w5, b5, w6, b6)

    if o_pad != out_dim:
        return out_padded[:, :out_dim]
    return out_padded


# ---------------------------------------------------------------------------
# Deterministic init mimicking torch.nn.Linear (uniform +/- 1/sqrt(fan_in)).
# ---------------------------------------------------------------------------
def init_params(key, input_dim, hidden_dim, output_dim):
    dims = [
        ("fc1", input_dim, hidden_dim),
        ("fc2", hidden_dim, hidden_dim),
        ("fc3", hidden_dim, hidden_dim),
        ("fc4", hidden_dim, hidden_dim),
        ("fc5", hidden_dim, hidden_dim),
        ("fc6", hidden_dim, output_dim),
    ]
    params = {}
    for name, fan_in, fan_out in dims:
        key, kw, kb = jax.random.split(key, 3)
        bound = 1.0 / (fan_in ** 0.5)
        # PyTorch Linear weight layout: (out_features, in_features)
        params[f"{name}_w"] = jax.random.uniform(
            kw, (fan_out, fan_in), jnp.float32, -bound, bound)
        params[f"{name}_b"] = jax.random.uniform(
            kb, (fan_out,), jnp.float32, -bound, bound)
    return params


def reference_forward(x, params):
    """Plain-JAX reproduction of the PyTorch forward (dead layers included)."""
    relu = lambda v: jnp.maximum(v, 0.0)
    y = relu(x @ params["fc1_w"].T + params["fc1_b"])
    y = relu(x @ params["fc2_w"].T + params["fc2_b"])
    y = relu(x @ params["fc3_w"].T + params["fc3_b"])
    y = relu(x @ params["fc4_w"].T + params["fc4_b"])
    y = relu(x @ params["fc5_w"].T + params["fc5_b"])
    return y @ params["fc6_w"].T + params["fc6_b"]


if __name__ == "__main__":
    key = jax.random.PRNGKey(0)

    # Module only type-checks when input_dim == hidden_dim (fc2..fc5 read x).
    batch, input_dim, hidden_dim, output_dim = 8, 32, 32, 16
    key, kx, kp = jax.random.split(key, 3)
    x = jax.random.normal(kx, (batch, input_dim), jnp.float32)
    params = init_params(kp, input_dim, hidden_dim, output_dim)
    ref = reference_forward(x, params)

    # 1) f32 compute path (exactness check).
    prep_f32 = prepare_params(params, compute_dtype=jnp.float32)
    out_f32 = jax.block_until_ready(mlp_classifier6_forward(x, prep_f32))
    assert out_f32.shape == (batch, output_dim)
    assert jnp.allclose(out_f32, ref, atol=1e-5, rtol=1e-5)

    # 2) bf16 compute path (default; MXU-native operands, f32 accumulation).
    prep_bf16 = prepare_params(params)
    out_bf16 = jax.block_until_ready(mlp_classifier6_forward(x, prep_bf16))
    assert out_bf16.shape == (batch, output_dim)
    assert jnp.allclose(out_bf16, ref, atol=5e-2, rtol=5e-2)

    # 3) Ragged batch (grid of 2 with a partial last block) -- exercises the
    #    no-padded-copy batch handling and the >=2-tile megacore split.
    key, kx2 = jax.random.split(key)
    x2 = jax.random.normal(kx2, (40, input_dim), jnp.float32)
    ref2 = reference_forward(x2, params)
    out2 = jax.block_until_ready(mlp_classifier6_forward(x2, prep_f32))
    assert out2.shape == (40, output_dim)
    assert jnp.allclose(out2, ref2, atol=1e-5, rtol=1e-5)

    # 4) Contraction-tiled fallback (hidden split across grid axis 1 with a
    #    VMEM f32 accumulator), forced at a small shape for coverage.
    in2 = hid2 = 256
    key, kx3, kp3 = jax.random.split(key, 3)
    x3 = jax.random.normal(kx3, (batch, in2), jnp.float32)
    params3 = init_params(kp3, in2, hid2, output_dim)
    ref3 = reference_forward(x3, params3)
    prep3 = prepare_params(params3, compute_dtype=jnp.float32)
    out3 = jax.block_until_ready(
        mlp_classifier6_forward(x3, prep3, force_hidden_tiling=True, tile_h=128))
    assert out3.shape == (batch, output_dim)
    assert jnp.allclose(out3, ref3, atol=1e-4, rtol=1e-4)

    print("KERNEL_OK")
</pallas_src>

<mosaic_0001>
module attributes {stable_mosaic.version = 11 : i64} {
  func.func @_mlp_resident_kernel(%arg0: i32, %arg1: memref<8x32xf32, #tpu.memory_space<vmem>>, %arg2: memref<32x128xf32, #tpu.memory_space<vmem>>, %arg3: memref<1x128xf32, #tpu.memory_space<vmem>>, %arg4: memref<128x128xf32, #tpu.memory_space<vmem>>, %arg5: memref<1x128xf32, #tpu.memory_space<vmem>>, %arg6: memref<8x128xf32, #tpu.memory_space<vmem>>) attributes {dimension_semantics = [#tpu.dimension_semantics<parallel>], iteration_bounds = array<i64: 1>, scalar_prefetch = 0 : i64, scratch_operands = 0 : i64, tpu.core_type = #tpu.core_type<tc>, window_params = [{transform_indices = @transform_0, window_bounds = array<i64: 8, 32>}, {pipeline_mode = #tpu.pipeline_mode<synchronous>, transform_indices = @transform_1, window_bounds = array<i64: 32, 128>}, {pipeline_mode = #tpu.pipeline_mode<synchronous>, transform_indices = @transform_2, window_bounds = array<i64: 1, 128>}, {pipeline_mode = #tpu.pipeline_mode<synchronous>, transform_indices = @transform_3, window_bounds = array<i64: 128, 128>}, {pipeline_mode = #tpu.pipeline_mode<synchronous>, transform_indices = @transform_4, window_bounds = array<i64: 1, 128>}, {transform_indices = @transform_5, window_bounds = array<i64: 8, 128>}]} {
    %c0 = arith.constant 0 : index
    %c0_0 = arith.constant 0 : index
    %0 = vector.load %arg1[%c0, %c0_0] : memref<8x32xf32, #tpu.memory_space<vmem>>, vector<8x32xf32>
    %c0_1 = arith.constant 0 : index
    %c0_2 = arith.constant 0 : index
    %1 = vector.load %arg2[%c0_1, %c0_2] : memref<32x128xf32, #tpu.memory_space<vmem>>, vector<32x128xf32>
    %cst = arith.constant dense<0.000000e+00> : vector<8x128xf32>
    %2 = tpu.matmul %0, %1, %cst {dimension_numbers = #tpu.dot_dimension_numbers<[1], [0], [0], [1], [0, 0, 1, 1], [], []>} : vector<8x32xf32>, vector<32x128xf32>, vector<8x128xf32> -> vector<8x128xf32>
    %c0_3 = arith.constant 0 : index
    %c0_4 = arith.constant 0 : index
    %3 = vector.load %arg3[%c0_3, %c0_4] : memref<1x128xf32, #tpu.memory_space<vmem>>, vector<1x128xf32>
    %4 = vector.broadcast %3 : vector<1x128xf32> to vector<8x128xf32>
    %5 = arith.addf %2, %4 : vector<8x128xf32>
    %cst_5 = arith.constant 0.000000e+00 : f32
    %6 = vector.broadcast %cst_5 : f32 to vector<8x128xf32>
    %7 = arith.maximumf %5, %6 : vector<8x128xf32>
    %c0_6 = arith.constant 0 : index
    %c0_7 = arith.constant 0 : index
    %8 = vector.load %arg4[%c0_6, %c0_7] : memref<128x128xf32, #tpu.memory_space<vmem>>, vector<128x128xf32>
    %cst_8 = arith.constant dense<0.000000e+00> : vector<8x128xf32>
    %9 = tpu.matmul %7, %8, %cst_8 {dimension_numbers = #tpu.dot_dimension_numbers<[1], [0], [0], [1], [0, 0, 1, 1], [], []>} : vector<8x128xf32>, vector<128x128xf32>, vector<8x128xf32> -> vector<8x128xf32>
    %c0_9 = arith.constant 0 : index
    %c0_10 = arith.constant 0 : index
    %10 = vector.load %arg5[%c0_9, %c0_10] : memref<1x128xf32, #tpu.memory_space<vmem>>, vector<1x128xf32>
    %11 = vector.broadcast %10 : vector<1x128xf32> to vector<8x128xf32>
    %12 = arith.addf %9, %11 : vector<8x128xf32>
    %c0_11 = arith.constant 0 : index
    %c0_12 = arith.constant 0 : index
    %13 = vector.load %arg6[%c0_11, %c0_12] : memref<8x128xf32, #tpu.memory_space<vmem>>, vector<8x128xf32>
    tpu.vector_store %arg6[%c0_11, %c0_12], %12 {strides = array<i32>} : memref<8x128xf32, #tpu.memory_space<vmem>>, vector<8x128xf32>,
    return
  }
  func.func @transform_0(%arg0: i32) -> (i32, i32) {
    %c0_i32 = arith.constant 0 : i32
    %c0_i32_0 = arith.constant 0 : i32
    return %arg0, %c0_i32 : i32, i32
  }
  func.func @transform_1(%arg0: i32) -> (i32, i32) {
    %c0_i32 = arith.constant 0 : i32
    %c0_i32_0 = arith.constant 0 : i32
    %c0_i32_1 = arith.constant 0 : i32
    return %c0_i32, %c0_i32_0 : i32, i32
  }
  func.func @transform_2(%arg0: i32) -> (i32, i32) {
    %c0_i32 = arith.constant 0 : i32
    %c0_i32_0 = arith.constant 0 : i32
    %c0_i32_1 = arith.constant 0 : i32
    return %c0_i32, %c0_i32_0 : i32, i32
  }
  func.func @transform_3(%arg0: i32) -> (i32, i32) {
    %c0_i32 = arith.constant 0 : i32
    %c0_i32_0 = arith.constant 0 : i32
    %c0_i32_1 = arith.constant 0 : i32
    return %c0_i32, %c0_i32_0 : i32, i32
  }
  func.func @transform_4(%arg0: i32) -> (i32, i32) {
    %c0_i32 = arith.constant 0 : i32
    %c0_i32_0 = arith.constant 0 : i32
    %c0_i32_1 = arith.constant 0 : i32
    return %c0_i32, %c0_i32_0 : i32, i32
  }
  func.func @transform_5(%arg0: i32) -> (i32, i32) {
    %c0_i32 = arith.constant 0 : i32
    %c0_i32_0 = arith.constant 0 : i32
    return %arg0, %c0_i32 : i32, i32
  }
}

module attributes {stable_mosaic.version = 11 : i64} {
  func.func @_mlp_resident_kernel(%arg0: i32, %arg1: memref<8x32xf32, #tpu.memory_space<vmem>>, %arg2: memref<32x128xf32, #tpu.memory_space<vmem>>, %arg3: memref<1x128xf32, #tpu.memory_space<vmem>>, %arg4: memref<128x128xf32, #tpu.memory_space<vmem>>, %arg5: memref<1x128xf32, #tpu.memory_space<vmem>>, %arg6: memref<8x128xf32, #tpu.memory_space<vmem>>) attributes {dimension_semantics = [#tpu.dimension_semantics<parallel>], iteration_bounds = array<i64: 1>, scalar_prefetch = 0 : i64, scratch_operands = 0 : i64, tpu.core_type = #tpu.core_type<tc>, window_params = [{transform_indices = @transform_0, window_bounds = array<i64: 8, 32>}, {pipeline_mode = #tpu.pipeline_mode<synchronous>, transform_indices = @transform_1, window_bounds = array<i64: 32, 128>}, {pipeline_mode = #tpu.pipeline_mode<synchronous>, transform_indices = @transform_2, window_bounds = array<i64: 1, 128>}, {pipeline_mode = #tpu.pipeline_mode<synchronous>, transform_indices = @transform_3, window_bounds = array<i64: 128, 128>}, {pipeline_mode = #tpu.pipeline_mode<synchronous>, transform_indices = @transform_4, window_bounds = array<i64: 1, 128>}, {transform_indices = @transform_5, window_bounds = array<i64: 8, 128>}]} {
    %c0 = arith.constant 0 : index
    %c0_0 = arith.constant 0 : index
    %0 = vector.load %arg1[%c0, %c0_0] : memref<8x32xf32, #tpu.memory_space<vmem>>, vector<8x32xf32>
    %c0_1 = arith.constant 0 : index
    %c0_2 = arith.constant 0 : index
    %1 = vector.load %arg2[%c0_1, %c0_2] : memref<32x128xf32, #tpu.memory_space<vmem>>, vector<32x128xf32>
    %cst = arith.constant dense<0.000000e+00> : vector<8x128xf32>
    %2 = tpu.matmul %0, %1, %cst {dimension_numbers = #tpu.dot_dimension_numbers<[1], [0], [0], [1], [0, 0, 1, 1], [], []>} : vector<8x32xf32>, vector<32x128xf32>, vector<8x128xf32> -> vector<8x128xf32>
    %c0_3 = arith.constant 0 : index
    %c0_4 = arith.constant 0 : index
    %3 = vector.load %arg3[%c0_3, %c0_4] : memref<1x128xf32, #tpu.memory_space<vmem>>, vector<1x128xf32>
    %4 = vector.broadcast %3 : vector<1x128xf32> to vector<8x128xf32>
    %5 = arith.addf %2, %4 : vector<8x128xf32>
    %cst_5 = arith.constant 0.000000e+00 : f32
    %6 = vector.broadcast %cst_5 : f32 to vector<8x128xf32>
    %7 = arith.maximumf %5, %6 : vector<8x128xf32>
    %c0_6 = arith.constant 0 : index
    %c0_7 = arith.constant 0 : index
    %8 = vector.load %arg4[%c0_6, %c0_7] : memref<128x128xf32, #tpu.memory_space<vmem>>, vector<128x128xf32>
    %cst_8 = arith.constant dense<0.000000e+00> : vector<8x128xf32>
    %9 = tpu.matmul %7, %8, %cst_8 {dimension_numbers = #tpu.dot_dimension_numbers<[1], [0], [0], [1], [0, 0, 1, 1], [], []>} : vector<8x128xf32>, vector<128x128xf32>, vector<8x128xf32> -> vector<8x128xf32>
    %c0_9 = arith.constant 0 : index
    %c0_10 = arith.constant 0 : index
    %10 = vector.load %arg5[%c0_9, %c0_10] : memref<1x128xf32, #tpu.memory_space<vmem>>, vector<1x128xf32>
    %11 = vector.broadcast %10 : vector<1x128xf32> to vector<8x128xf32>
    %12 = arith.addf %9, %11 : vector<8x128xf32>
    %c0_11 = arith.constant 0 : index
    %c0_12 = arith.constant 0 : index
    %13 = vector.load %arg6[%c0_11, %c0_12] : memref<8x128xf32, #tpu.memory_space<vmem>>, vector<8x128xf32>
    tpu.vector_store %arg6[%c0_11, %c0_12], %12 {strides = array<i32>} : memref<8x128xf32, #tpu.memory_space<vmem>>, vector<8x128xf32>,
    return
  }
  func.func @transform_0(%arg0: i32) -> (i32, i32) {
    %c0_i32 = arith.constant 0 : i32
    %c0_i32_0 = arith.constant 0 : i32
    return %arg0, %c0_i32 : i32, i32
  }
  func.func @transform_1(%arg0: i32) -> (i32, i32) {
    %c0_i32 = arith.constant 0 : i32
    %c0_i32_0 = arith.constant 0 : i32
    %c0_i32_1 = arith.constant 0 : i32
    return %c0_i32, %c0_i32_0 : i32, i32
  }
  func.func @transform_2(%arg0: i32) -> (i32, i32) {
    %c0_i32 = arith.constant 0 : i32
    %c0_i32_0 = arith.constant 0 : i32
    %c0_i32_1 = arith.constant 0 : i32
    return %c0_i32, %c0_i32_0 : i32, i32
  }
  func.func @transform_3(%arg0: i32) -> (i32, i32) {
    %c0_i32 = arith.constant 0 : i32
    %c0_i32_0 = arith.constant 0 : i32
    %c0_i32_1 = arith.constant 0 : i32
    return %c0_i32, %c0_i32_0 : i32, i32
  }
  func.func @transform_4(%arg0: i32) -> (i32, i32) {
    %c0_i32 = arith.constant 0 : i32
    %c0_i32_0 = arith.constant 0 : i32
    %c0_i32_1 = arith.constant 0 : i32
    return %c0_i32, %c0_i32_0 : i32, i32
  }
  func.func @transform_5(%arg0: i32) -> (i32, i32) {
    %c0_i32 = arith.constant 0 : i32
    %c0_i32_0 = arith.constant 0 : i32
    return %arg0, %c0_i32 : i32, i32
  }
}

</mosaic_0001>

<bundles_post_ra>
// kernel: tpu_custom_call.1
= control target key start
LH: loop header
LB: loop body
LE: loop exit
PB: predicated region body
PF: predicated region fallthrough
CT: control target
= control target key end

     0   :  { %10 = vsyncpa [#allocation3], 0  ;;  %s500_s0 = inlined_call_operand.hbm [shape: f32[8,32], index: 0, kind: input, shape index: {}]   ;;  %s501_s1 = inlined_call_operand.hbm [shape: f32[32,128], index: 1, kind: input, shape index: {}]   ;;  %s502_s2 = inlined_call_operand.vmem [shape: f32[1,128], index: 2, kind: input, shape index: {}]   ;;  %s503_s3 = inlined_call_operand.hbm [shape: f32[128,128], index: 3, kind: input, shape index: {}]   ;;  %s504_s4 = inlined_call_operand.vmem [shape: f32[1,128], index: 4, kind: input, shape index: {}]   ;;  %s505_s5 = inlined_call_operand.hbm [shape: f32[8,128], index: 5, kind: output, shape index: {}]  }
   0x1   :  { %11 = vsyncpa [#allocation6], 0 }
   0x2   :  { %12 = vsyncpa [#allocation4], 0  ;;  %s422_s18 = smov [#allocation5]  }
   0x3   :  { %s28_s19 = sshll.u32 %s422_s18, 4  ;;  %s29_s19 = int_to_ptr.vmem [resolvable:$true] %s28_s19 }
   0x4   :  { %s344_s20 = scalar_lea.vmem %s29_s19, 512  ;;  %p349_p1 = scmp.lt.s32.totalorder %s29_s19, %s29_s19 }
   0x5   :  { %p345_p0 = scmp.ne.s32.totalorder %s29_s19, %s344_s20  ;;  %p350_p2 = scmp.lt.s32.totalorder %s344_s20, %s344_s20 }
   0x7   :  { %p351_p3 = por %p350_p2, %p349_p1 }
   0x9   :  { %p352_p4 = pnand %p351_p3, %p345_p0 }
   0xb   :  { %355 = shalt.err (!%p352_p4)
}
   0xc   :  { %s423_s21 = smov 128   ;;  %s424_s22 = smov 8  }
   0xd   :  { %34 = dma.hbm_to_vmem [thread:$0]  %s501_s1, 512, %s29_s19, [#allocation6], %s423_s21, %s423_s21, %s424_s22  }
   0xe   :  { %s425_s25 = smov [#allocation2]   ;;  %s426_s27 = smov [#allocation7]  }
   0xf   :  { %s19_s26 = sshll.u32 %s425_s25, 4  ;;  %s42_s28 = sshll.u32 %s426_s27, 4  ;;  %s20_s26 = int_to_ptr.vmem [resolvable:$true] %s19_s26  ;;  %s43_s28 = int_to_ptr.vmem [resolvable:$true] %s42_s28 }
  0x10   :  { %s364_s29 = scalar_lea.vmem %s20_s26, 128  ;;  %p369_p6 = scmp.lt.s32.totalorder %s20_s26, %s20_s26 }
  0x11   :  { %p365_p5 = scmp.ne.s32.totalorder %s20_s26, %s364_s29  ;;  %p370_p7 = scmp.lt.s32.totalorder %s364_s29, %s364_s29 }
  0x13   :  { %p371_p8 = por %p370_p7, %p369_p6 }
  0x15   :  { %p372_p9 = pnand %p371_p8, %p365_p5 }
  0x17   :  { %375 = shalt.err (!%p372_p9)
}
  0x18   :  { %22 = dma.hbm_to_vmem [thread:$0]  %s500_s0, 128, %s20_s26, [#allocation3]  }
  0x19   :  { %s384_s7 = scalar_lea.vmem %s43_s28, 2048  ;;  %p389_p11 = scmp.lt.s32.totalorder %s43_s28, %s43_s28 }
  0x1a   :  { %p385_p10 = scmp.ne.s32.totalorder %s43_s28, %s384_s7  ;;  %p390_p12 = scmp.lt.s32.totalorder %s384_s7, %s384_s7 }
  0x1c   :  { %p391_p13 = por %p390_p12, %p389_p11 }
  0x1e   :  { %p392_p0 = pnand %p391_p13, %p385_p10 }
  0x20   :  { %395 = shalt.err (!%p392_p0)
}
  0x21   :  { %48 = dma.hbm_to_vmem [thread:$0]  %s503_s3, 2048, %s43_s28, [#allocation6], %s423_s21, %s423_s21, %s424_s22  }
  0x22   :  { %416 = dma.done.wait [#allocation3], 128  }
  0x23   :  { %417 = vsyncadd [#allocation3], 4294967168 }
  0x24   :  { %418 = dma.done.wait [#allocation6], 2560  }
  0x25   :  { %419 = vsyncadd [#allocation6], 4294964736  ;;  %v427_v0 = vmov 0.0   ;;  %vm428_vm0 = vmmov 0   ;;  %v64_v1 = vld [vmem:[#allocation5 + $0x18] sm:$0xff]  ;;  %v63_v2 = vld [vmem:[#allocation5 + $0x10] sm:$0xff] }
  0x26   :  { %282 = vmatprep.subr.mxu0 %v427_v0  ;;  %290 = vmatprep.mubr.msk.f32.mxu0 %vm428_vm0, %v427_v0  ;;  %v162_v3 = vld [vmem:[#allocation7 + $0x78] sm:$0xff]  ;;  %v62_v4 = vld [vmem:[#allocation5 + $0x8] sm:$0xff]  ;;  %v161_v5 = vld [vmem:[#allocation7 + $0x70] sm:$0xff]  ;;  %vm72_vm1 = vcmask 261120   ;;  %s429_s11 = smov [#allocation8]  }
  0x27   :  { %293 = vmatprep.subr.mxu1 %v427_v0  ;;  %325 = vmatprep.mubr.msk.f32.mxu1 %vm428_vm0, %v427_v0  ;;  %v160_v6 = vld [vmem:[#allocation7 + $0x68] sm:$0xff]  ;;  %v61_v7 = vld [vmem:[#allocation5] sm:$0xff]  ;;  %v60_v8 = vld [vmem:[#allocation2] sm:$0xff]  ;;  %s247_s12 = sshll.u32 %s429_s11, 4  ;;  %s248_s12 = int_to_ptr.vmem [resolvable:$true] %s247_s12 }
  0x28   :  { %283 = vmatpush3.msra.mxu0 %v64_v1  ;;  %294 = vmatpush3.msra.mxu1 %v162_v3  ;;  %v159_v9 = vld [vmem:[#allocation7 + $0x60] sm:$0xff]  ;;  %v158_v10 = vld [vmem:[#allocation7 + $0x58] sm:$0xff]  ;;  %v157_v11 = vld [vmem:[#allocation7 + $0x50] sm:$0xff]  ;;  %s396_s13 = scalar_lea.vmem %s248_s12, 128  ;;  %p401_p2 = scmp.lt.s32.totalorder %s248_s12, %s248_s12 }
  0x29   :  { %284 = vmatprep.subr.mxu0 %v427_v0  ;;  %295 = vmatprep.subr.mxu1 %v427_v0  ;;  %v156_v12 = vld [vmem:[#allocation7 + $0x48] sm:$0xff]  ;;  %v155_v13 = vld [vmem:[#allocation7 + $0x40] sm:$0xff]  ;;  %v154_v14 = vld [vmem:[#allocation7 + $0x38] sm:$0xff]  ;;  %p397_p1 = scmp.ne.s32.totalorder %s248_s12, %s396_s13  ;;  %p402_p3 = scmp.lt.s32.totalorder %s396_s13, %s396_s13 }
  0x2a   :  { %285 = vmatpush3.msra.mxu0 %v63_v2  ;;  %296 = vmatpush3.msra.mxu1 %v161_v5  ;;  %v153_v15 = vld [vmem:[#allocation7 + $0x30] sm:$0xff]  ;;  %v152_v16 = vld [vmem:[#allocation7 + $0x28] sm:$0xff]  ;;  %v151_v17 = vld [vmem:[#allocation7 + $0x20] sm:$0xff] }
  0x2b   :  { %286 = vmatprep.subr.mxu0 %v427_v0  ;;  %297 = vmatprep.subr.mxu1 %v427_v0  ;;  %v150_v18 = vld [vmem:[#allocation7 + $0x18] sm:$0xff]  ;;  %v149_v19 = vld [vmem:[#allocation7 + $0x10] sm:$0xff]  ;;  %v148_v20 = vld [vmem:[#allocation7 + $0x8] sm:$0xff]  ;;  %p403_p4 = por %p402_p3, %p401_p2 }
  0x2c   :  { %287 = vmatpush3.msra.mxu0 %v62_v4  ;;  %298 = vmatpush3.msra.mxu1 %v160_v6  ;;  %v147_v21 = vld [vmem:[#allocation7] sm:$0xff]  ;;  %v257_v22 = vld [vmem:[%s502_s2] ss:$0 sm:$0xff] }
  0x2d   :  { %288 = vmatprep.subr.mxu0 %v427_v0  ;;  %299 = vmatprep.subr.mxu1 %v427_v0  ;;  %v259_v27 = vld [vmem:[%s504_s4] ss:$0 sm:$0xff]  ;;  %p404_p5 = pnand %p403_p4, %p397_p1 }
  0x2e   :  { %289 = vmatpush3.msra.mxu0 %v61_v7  ;;  %300 = vmatpush3.msra.mxu1 %v159_v9 }
  0x2f   :  { %291 = vmatmul.mubr.msk.f32.vlgmr.msra.gmra.mxu0 %vm72_vm1, %v60_v8  ;;  %301 = vmatprep.subr.mxu1 %v427_v0 }
  0x30   :  { %302 = vmatpush3.msra.mxu1 %v158_v10 }
  0x31   :  { %303 = vmatprep.subr.mxu1 %v427_v0 }
  0x32   :  { %304 = vmatpush3.msra.mxu1 %v157_v11 }
  0x33   :  { %305 = vmatprep.subr.mxu1 %v427_v0 }
  0x34   :  { %306 = vmatpush3.msra.mxu1 %v156_v12 }
  0x35   :  { %307 = vmatprep.subr.mxu1 %v427_v0 }
  0x36   :  { %308 = vmatpush3.msra.mxu1 %v155_v13 }
  0x37   :  { %309 = vmatprep.subr.mxu1 %v427_v0 }
  0x38   :  { %310 = vmatpush3.msra.mxu1 %v154_v14 }
  0x39   :  { %311 = vmatprep.subr.mxu1 %v427_v0 }
  0x3a   :  { %312 = vmatpush3.msra.mxu1 %v153_v15 }
  0x3b   :  { %313 = vmatprep.subr.mxu1 %v427_v0 }
  0x3c   :  { %314 = vmatpush3.msra.mxu1 %v152_v16 }
  0x3d   :  { %315 = vmatprep.subr.mxu1 %v427_v0 }
  0x3e   :  { %316 = vmatpush3.msra.mxu1 %v151_v17 }
  0x3f   :  { %317 = vmatprep.subr.mxu1 %v427_v0 }
  0x40   :  { %318 = vmatpush3.msra.mxu1 %v150_v18 }
  0x41   :  { %319 = vmatprep.subr.mxu1 %v427_v0 }
  0x42   :  { %320 = vmatpush3.msra.mxu1 %v149_v19 }
  0x43   :  { %321 = vmatprep.subr.mxu1 %v427_v0 }
  0x44   :  { %322 = vmatpush3.msra.mxu1 %v148_v20 }
  0x45   :  { %323 = vmatprep.subr.mxu1 %v427_v0 }
  0x46   :  { %324 = vmatpush3.msra.mxu1 %v147_v21 }
  0xef   :  { %v142_v23 = vpop.f32.mrf.mxu0 }
  0xf0   :  { %v143_v24 = vadd.f32 %v257_v22, %v142_v23 }
  0xf1   :  { %v292_v25 = vpop.f32.mrf.mxu0 }
  0xf2   :  { %v146_v26 = vmax.f32 %v143_v24, 0.0 }
  0xf4   :  { %326 = vmatmul.mubr.f32.vlgmr.msra.gmra.mxu1 %v146_v26 }
 0x1b4   :  { %v236_v28 = vpop.f32.mrf.mxu1 }
 0x1b5   :  { %v237_v29 = vadd.f32 %v259_v27, %v236_v28 }
 0x1b6   :  { %v327_v30 = vpop.f32.mrf.mxu1 }
 0x1b7   :  { %240 = vst [vmem:[#allocation8] sm:$0xff] %v237_v29 }
 0x1b8   :  { %407 = shalt.err (!%p404_p5)
}
 0x1b9   :  { %250 = dma.vmem_to_hbm [thread:$0]  %s248_s12, 128, %s505_s5, [#allocation4]  }
 0x1ba   :  { %420 = dma.done.wait [#allocation4], 128  }
 0x1bb   :  { %421 = vsyncadd [#allocation4], 4294967168 }
 0x1bc   :  { %254 = vsyncpa [#allocation3], 1 }
 0x1bd   :  { %255 = vsyncpa [#allocation6], 1 }
 0x1be   :  { %256 = vsyncpa [#allocation4], 1 }

// kernel: tpu_custom_call.1
= control target key start
LH: loop header
LB: loop body
LE: loop exit
PB: predicated region body
PF: predicated region fallthrough
CT: control target
= control target key end

     0   :  { %10 = vsyncpa [#allocation3], 0  ;;  %s500_s0 = inlined_call_operand.hbm [shape: f32[8,32], index: 0, kind: input, shape index: {}]   ;;  %s501_s1 = inlined_call_operand.hbm [shape: f32[32,128], index: 1, kind: input, shape index: {}]   ;;  %s502_s2 = inlined_call_operand.vmem [shape: f32[1,128], index: 2, kind: input, shape index: {}]   ;;  %s503_s3 = inlined_call_operand.hbm [shape: f32[128,128], index: 3, kind: input, shape index: {}]   ;;  %s504_s4 = inlined_call_operand.vmem [shape: f32[1,128], index: 4, kind: input, shape index: {}]   ;;  %s505_s5 = inlined_call_operand.hbm [shape: f32[8,128], index: 5, kind: output, shape index: {}]  }
   0x1   :  { %11 = vsyncpa [#allocation6], 0 }
   0x2   :  { %12 = vsyncpa [#allocation4], 0  ;;  %s422_s18 = smov [#allocation5]  }
   0x3   :  { %s28_s19 = sshll.u32 %s422_s18, 4  ;;  %s29_s19 = int_to_ptr.vmem [resolvable:$true] %s28_s19 }
   0x4   :  { %s344_s20 = scalar_lea.vmem %s29_s19, 512  ;;  %p349_p1 = scmp.lt.s32.totalorder %s29_s19, %s29_s19 }
   0x5   :  { %p345_p0 = scmp.ne.s32.totalorder %s29_s19, %s344_s20  ;;  %p350_p2 = scmp.lt.s32.totalorder %s344_s20, %s344_s20 }
   0x7   :  { %p351_p3 = por %p350_p2, %p349_p1 }
   0x9   :  { %p352_p4 = pnand %p351_p3, %p345_p0 }
   0xb   :  { %355 = shalt.err (!%p352_p4)
}
   0xc   :  { %s423_s21 = smov 128   ;;  %s424_s22 = smov 8  }
   0xd   :  { %34 = dma.hbm_to_vmem [thread:$0]  %s501_s1, 512, %s29_s19, [#allocation6], %s423_s21, %s423_s21, %s424_s22  }
   0xe   :  { %s425_s25 = smov [#allocation2]   ;;  %s426_s27 = smov [#allocation7]  }
   0xf   :  { %s19_s26 = sshll.u32 %s425_s25, 4  ;;  %s42_s28 = sshll.u32 %s426_s27, 4  ;;  %s20_s26 = int_to_ptr.vmem [resolvable:$true] %s19_s26  ;;  %s43_s28 = int_to_ptr.vmem [resolvable:$true] %s42_s28 }
  0x10   :  { %s364_s29 = scalar_lea.vmem %s20_s26, 128  ;;  %p369_p6 = scmp.lt.s32.totalorder %s20_s26, %s20_s26 }
  0x11   :  { %p365_p5 = scmp.ne.s32.totalorder %s20_s26, %s364_s29  ;;  %p370_p7 = scmp.lt.s32.totalorder %s364_s29, %s364_s29 }
  0x13   :  { %p371_p8 = por %p370_p7, %p369_p6 }
  0x15   :  { %p372_p9 = pnand %p371_p8, %p365_p5 }
  0x17   :  { %375 = shalt.err (!%p372_p9)
}
  0x18   :  { %22 = dma.hbm_to_vmem [thread:$0]  %s500_s0, 128, %s20_s26, [#allocation3]  }
  0x19   :  { %s384_s7 = scalar_lea.vmem %s43_s28, 2048  ;;  %p389_p11 = scmp.lt.s32.totalorder %s43_s28, %s43_s28 }
  0x1a   :  { %p385_p10 = scmp.ne.s32.totalorder %s43_s28, %s384_s7  ;;  %p390_p12 = scmp.lt.s32.totalorder %s384_s7, %s384_s7 }
  0x1c   :  { %p391_p13 = por %p390_p12, %p389_p11 }
  0x1e   :  { %p392_p0 = pnand %p391_p13, %p385_p10 }
  0x20   :  { %395 = shalt.err (!%p392_p0)
}
  0x21   :  { %48 = dma.hbm_to_vmem [thread:$0]  %s503_s3, 2048, %s43_s28, [#allocation6], %s423_s21, %s423_s21, %s424_s22  }
  0x22   :  { %416 = dma.done.wait [#allocation3], 128  }
  0x23   :  { %417 = vsyncadd [#allocation3], 4294967168 }
  0x24   :  { %418 = dma.done.wait [#allocation6], 2560  }
  0x25   :  { %419 = vsyncadd [#allocation6], 4294964736  ;;  %v427_v0 = vmov 0.0   ;;  %vm428_vm0 = vmmov 0   ;;  %v64_v1 = vld [vmem:[#allocation5 + $0x18] sm:$0xff]  ;;  %v63_v2 = vld [vmem:[#allocation5 + $0x10] sm:$0xff] }
  0x26   :  { %282 = vmatprep.subr.mxu0 %v427_v0  ;;  %290 = vmatprep.mubr.msk.f32.mxu0 %vm428_vm0, %v427_v0  ;;  %v162_v3 = vld [vmem:[#allocation7 + $0x78] sm:$0xff]  ;;  %v62_v4 = vld [vmem:[#allocation5 + $0x8] sm:$0xff]  ;;  %v161_v5 = vld [vmem:[#allocation7 + $0x70] sm:$0xff]  ;;  %vm72_vm1 = vcmask 261120   ;;  %s429_s11 = smov [#allocation8]  }
  0x27   :  { %293 = vmatprep.subr.mxu1 %v427_v0  ;;  %325 = vmatprep.mubr.msk.f32.mxu1 %vm428_vm0, %v427_v0  ;;  %v160_v6 = vld [vmem:[#allocation7 + $0x68] sm:$0xff]  ;;  %v61_v7 = vld [vmem:[#allocation5] sm:$0xff]  ;;  %v60_v8 = vld [vmem:[#allocation2] sm:$0xff]  ;;  %s247_s12 = sshll.u32 %s429_s11, 4  ;;  %s248_s12 = int_to_ptr.vmem [resolvable:$true] %s247_s12 }
  0x28   :  { %283 = vmatpush3.msra.mxu0 %v64_v1  ;;  %294 = vmatpush3.msra.mxu1 %v162_v3  ;;  %v159_v9 = vld [vmem:[#allocation7 + $0x60] sm:$0xff]  ;;  %v158_v10 = vld [vmem:[#allocation7 + $0x58] sm:$0xff]  ;;  %v157_v11 = vld [vmem:[#allocation7 + $0x50] sm:$0xff]  ;;  %s396_s13 = scalar_lea.vmem %s248_s12, 128  ;;  %p401_p2 = scmp.lt.s32.totalorder %s248_s12, %s248_s12 }
  0x29   :  { %284 = vmatprep.subr.mxu0 %v427_v0  ;;  %295 = vmatprep.subr.mxu1 %v427_v0  ;;  %v156_v12 = vld [vmem:[#allocation7 + $0x48] sm:$0xff]  ;;  %v155_v13 = vld [vmem:[#allocation7 + $0x40] sm:$0xff]  ;;  %v154_v14 = vld [vmem:[#allocation7 + $0x38] sm:$0xff]  ;;  %p397_p1 = scmp.ne.s32.totalorder %s248_s12, %s396_s13  ;;  %p402_p3 = scmp.lt.s32.totalorder %s396_s13, %s396_s13 }
  0x2a   :  { %285 = vmatpush3.msra.mxu0 %v63_v2  ;;  %296 = vmatpush3.msra.mxu1 %v161_v5  ;;  %v153_v15 = vld [vmem:[#allocation7 + $0x30] sm:$0xff]  ;;  %v152_v16 = vld [vmem:[#allocation7 + $0x28] sm:$0xff]  ;;  %v151_v17 = vld [vmem:[#allocation7 + $0x20] sm:$0xff] }
  0x2b   :  { %286 = vmatprep.subr.mxu0 %v427_v0  ;;  %297 = vmatprep.subr.mxu1 %v427_v0  ;;  %v150_v18 = vld [vmem:[#allocation7 + $0x18] sm:$0xff]  ;;  %v149_v19 = vld [vmem:[#allocation7 + $0x10] sm:$0xff]  ;;  %v148_v20 = vld [vmem:[#allocation7 + $0x8] sm:$0xff]  ;;  %p403_p4 = por %p402_p3, %p401_p2 }
  0x2c   :  { %287 = vmatpush3.msra.mxu0 %v62_v4  ;;  %298 = vmatpush3.msra.mxu1 %v160_v6  ;;  %v147_v21 = vld [vmem:[#allocation7] sm:$0xff]  ;;  %v257_v22 = vld [vmem:[%s502_s2] ss:$0 sm:$0xff] }
  0x2d   :  { %288 = vmatprep.subr.mxu0 %v427_v0  ;;  %299 = vmatprep.subr.mxu1 %v427_v0  ;;  %v259_v27 = vld [vmem:[%s504_s4] ss:$0 sm:$0xff]  ;;  %p404_p5 = pnand %p403_p4, %p397_p1 }
  0x2e   :  { %289 = vmatpush3.msra.mxu0 %v61_v7  ;;  %300 = vmatpush3.msra.mxu1 %v159_v9 }
  0x2f   :  { %291 = vmatmul.mubr.msk.f32.vlgmr.msra.gmra.mxu0 %vm72_vm1, %v60_v8  ;;  %301 = vmatprep.subr.mxu1 %v427_v0 }
  0x30   :  { %302 = vmatpush3.msra.mxu1 %v158_v10 }
  0x31   :  { %303 = vmatprep.subr.mxu1 %v427_v0 }
  0x32   :  { %304 = vmatpush3.msra.mxu1 %v157_v11 }
  0x33   :  { %305 = vmatprep.subr.mxu1 %v427_v0 }
  0x34   :  { %306 = vmatpush3.msra.mxu1 %v156_v12 }
  0x35   :  { %307 = vmatprep.subr.mxu1 %v427_v0 }
  0x36   :  { %308 = vmatpush3.msra.mxu1 %v155_v13 }
  0x37   :  { %309 = vmatprep.subr.mxu1 %v427_v0 }
  0x38   :  { %310 = vmatpush3.msra.mxu1 %v154_v14 }
  0x39   :  { %311 = vmatprep.subr.mxu1 %v427_v0 }
  0x3a   :  { %312 = vmatpush3.msra.mxu1 %v153_v15 }
  0x3b   :  { %313 = vmatprep.subr.mxu1 %v427_v0 }
  0x3c   :  { %314 = vmatpush3.msra.mxu1 %v152_v16 }
  0x3d   :  { %315 = vmatprep.subr.mxu1 %v427_v0 }
  0x3e   :  { %316 = vmatpush3.msra.mxu1 %v151_v17 }
  0x3f   :  { %317 = vmatprep.subr.mxu1 %v427_v0 }
  0x40   :  { %318 = vmatpush3.msra.mxu1 %v150_v18 }
  0x41   :  { %319 = vmatprep.subr.mxu1 %v427_v0 }
  0x42   :  { %320 = vmatpush3.msra.mxu1 %v149_v19 }
  0x43   :  { %321 = vmatprep.subr.mxu1 %v427_v0 }
  0x44   :  { %322 = vmatpush3.msra.mxu1 %v148_v20 }
  0x45   :  { %323 = vmatprep.subr.mxu1 %v427_v0 }
  0x46   :  { %324 = vmatpush3.msra.mxu1 %v147_v21 }
  0xef   :  { %v142_v23 = vpop.f32.mrf.mxu0 }
  0xf0   :  { %v143_v24 = vadd.f32 %v257_v22, %v142_v23 }
  0xf1   :  { %v292_v25 = vpop.f32.mrf.mxu0 }
  0xf2   :  { %v146_v26 = vmax.f32 %v143_v24, 0.0 }
  0xf4   :  { %326 = vmatmul.mubr.f32.vlgmr.msra.gmra.mxu1 %v146_v26 }
 0x1b4   :  { %v236_v28 = vpop.f32.mrf.mxu1 }
 0x1b5   :  { %v237_v29 = vadd.f32 %v259_v27, %v236_v28 }
 0x1b6   :  { %v327_v30 = vpop.f32.mrf.mxu1 }
 0x1b7   :  { %240 = vst [vmem:[#allocation8] sm:$0xff] %v237_v29 }
 0x1b8   :  { %407 = shalt.err (!%p404_p5)
}
 0x1b9   :  { %250 = dma.vmem_to_hbm [thread:$0]  %s248_s12, 128, %s505_s5, [#allocation4]  }
 0x1ba   :  { %420 = dma.done.wait [#allocation4], 128  }
 0x1bb   :  { %421 = vsyncadd [#allocation4], 4294967168 }
 0x1bc   :  { %254 = vsyncpa [#allocation3], 1 }
 0x1bd   :  { %255 = vsyncpa [#allocation6], 1 }
 0x1be   :  { %256 = vsyncpa [#allocation4], 1 }

</bundles_post_ra>
